<compile_context>
chip_gen: v7x
topology: tpu7x:2x2x1
jax: 0.10.0
libtpu: 0.0.40
codegen_flags: <defaults>
</compile_context>

<pallas_src>
from functools import partial

import jax
import jax.numpy as jnp
from jax.experimental import pallas as pl
from jax.experimental.pallas import tpu as pltpu


def _fr_stats_kernel(*refs, num_paths):
    """Phase 1: per-channel sum and sum-of-squares of y_i = w_i @ p_i.

    refs = [p_0..p_{P-1} (Cin, SP)] + [w_0..w_{P-1} (Co_i, Cin)]
         + [sum_0..sum_{P-1} (Co_i, 1)] + [sq_0..sq_{P-1} (Co_i, 1)]
    """
    p_refs = refs[:num_paths]
    w_refs = refs[num_paths:2 * num_paths]
    sum_refs = refs[2 * num_paths:3 * num_paths]
    sq_refs = refs[3 * num_paths:]

    first = (pl.program_id(0) == 0) & (pl.program_id(1) == 0)

    @pl.when(first)
    def _():
        for r in (*sum_refs, *sq_refs):
            r[...] = jnp.zeros_like(r)

    for p_ref, w_ref, s_ref, q_ref in zip(p_refs, w_refs, sum_refs, sq_refs):
        y = jnp.dot(w_ref[...], p_ref[...], preferred_element_type=jnp.float32)
        s_ref[...] += jnp.sum(y, axis=1, keepdims=True)
        q_ref[...] += jnp.sum(y * y, axis=1, keepdims=True)


def _fr_norm_kernel(*refs, num_paths):
    """Phase 2: o[off:off+Co_i] = (w_i @ p_i) * scale + bias (BN + affine folded)."""
    p_refs = refs[:num_paths]
    w_refs = refs[num_paths:2 * num_paths]
    scale_ref, bias_ref, o_ref = refs[2 * num_paths:]

    off = 0
    for p_ref, w_ref in zip(p_refs, w_refs):
        co = w_ref.shape[0]
        y = jnp.dot(w_ref[...], p_ref[...], preferred_element_type=jnp.float32)
        o_ref[off:off + co, :] = (
            y * scale_ref[off:off + co, :] + bias_ref[off:off + co, :]
        ).astype(o_ref.dtype)
        off += co


def _pick_spatial_tile(m, cap=2048):
    """Largest tile <= cap dividing m; prefer multiples of 128 (lane-dense IO)."""
    if m <= cap:
        return m
    for d in range(cap - cap % 128, 0, -128):
        if m % d == 0:
            return d
    return m


def _fr_pallas(paths, weights, gamma, beta, eps, out_dtype):
    """paths: list of (N, Cin, M); weights: list of (Co_i, Cin). Returns (N, Cout, M)."""
    num_paths = len(paths)
    n, cin, m = paths[0].shape
    cos = [int(w.shape[0]) for w in weights]
    cout = sum(cos)
    sp = _pick_spatial_tile(m)
    grid = (n, m // sp)

    p_specs = [pl.BlockSpec((None, cin, sp), lambda i, j: (i, 0, j)) for _ in paths]
    w_specs = [pl.BlockSpec((co, cin), lambda i, j: (0, 0)) for co in cos]

    # Phase 1: batch statistics (per-channel sum, sum of squares).
    stats = pl.pallas_call(
        partial(_fr_stats_kernel, num_paths=num_paths),
        out_shape=tuple(jax.ShapeDtypeStruct((co, 1), jnp.float32) for co in cos) * 2,
        grid_spec=pltpu.PrefetchScalarGridSpec(
            num_scalar_prefetch=0,
            grid=grid,
            in_specs=p_specs + w_specs,
            out_specs=[pl.BlockSpec((co, 1), lambda i, j: (0, 0)) for co in cos] * 2,
        ),
        compiler_params=pltpu.CompilerParams(
            dimension_semantics=("arbitrary", "arbitrary")),
    )(*paths, *weights)
    sums = jnp.concatenate(stats[:num_paths], axis=0)   # (Cout, 1)
    sqs = jnp.concatenate(stats[num_paths:], axis=0)    # (Cout, 1)

    # Fold BN (batch stats, biased variance) + affine into per-channel scale/bias.
    count = n * m
    mean = sums / count
    var = jnp.maximum(sqs / count - mean * mean, 0.0)
    inv = jax.lax.rsqrt(var + eps)
    scale = gamma.reshape(-1, 1).astype(jnp.float32) * inv
    bias = beta.reshape(-1, 1).astype(jnp.float32) - mean * scale

    # Phase 2: normalize. Fully parallel grid, lane-dense NCHW-layout output.
    out = pl.pallas_call(
        partial(_fr_norm_kernel, num_paths=num_paths),
        out_shape=jax.ShapeDtypeStruct((n, cout, m), out_dtype),
        grid_spec=pltpu.PrefetchScalarGridSpec(
            num_scalar_prefetch=0,
            grid=grid,
            in_specs=p_specs + w_specs + [
                pl.BlockSpec((cout, 1), lambda i, j: (0, 0)),
                pl.BlockSpec((cout, 1), lambda i, j: (0, 0)),
            ],
            out_specs=pl.BlockSpec((None, cout, sp), lambda i, j: (i, 0, j)),
        ),
        compiler_params=pltpu.CompilerParams(
            dimension_semantics=("parallel", "parallel")),
    )(*paths, *weights, scale, bias)
    return out


def factorized_reduction(x, params, *, stride=2, eps=1e-5):
    """Forward pass of FactorizedReduction.

    x: (N, Cin, H, W) NCHW.
    stride=2 params: w1, w2 (Cout//2, Cin, 1, 1), gamma, beta (Cout,)
    stride=1 params: w (Cout, Cin, 1, 1), gamma, beta (Cout,)
    returns (N, Cout, Ho, Wo) NCHW.
    """
    n, cin, h, w = x.shape

    if stride == 1:
        wc = params["w"][:, :, 0, 0].astype(x.dtype)          # (Cout, Cin)
        cout = wc.shape[0]
        ho, wo = h, w
        paths = [x.reshape(n, cin, h * w)]
        weights = [wc]
    else:
        w1 = params["w1"][:, :, 0, 0].astype(x.dtype)         # (Cout//2, Cin)
        w2 = params["w2"][:, :, 0, 0].astype(x.dtype)
        cout = w1.shape[0] + w2.shape[0]
        # path1: AvgPool2d(kernel=1, stride) == strided subsample.
        p1 = x[:, :, ::stride, ::stride]
        if stride == 2 and h % 2 == 0 and w % 2 == 0:
            # pad+shift+subsample never samples the zero row/col when H,W are even.
            p2 = x[:, :, 1::2, 1::2]
        else:
            xs = jnp.pad(x, ((0, 0), (0, 0), (0, 1), (0, 1)))[:, :, 1:, 1:]
            p2 = xs[:, :, ::stride, ::stride]
        ho, wo = p1.shape[2], p1.shape[3]
        # NCHW already has channels on sublanes / spatial on lanes: no transposes.
        paths = [p1.reshape(n, cin, ho * wo), p2.reshape(n, cin, ho * wo)]
        weights = [w1, w2]
    # TODO(synk): fold the stride-2 subsample into the kernel DMA (strided HBM->VMEM
    # copy via pl.ds(..., stride)) to remove the remaining wrapper slice pass.

    out = _fr_pallas(paths, weights, params["gamma"], params["beta"], eps, x.dtype)
    return out.reshape(n, cout, ho, wo)


def reference(x, params, *, stride=2, eps=1e-5):
    """Pure-JAX reference with the same semantics as the PyTorch module."""
    if stride == 1:
        y = jnp.einsum('oc,nchw->nohw', params["w"][:, :, 0, 0], x)
    else:
        p1 = x[:, :, ::stride, ::stride]
        xs = jnp.pad(x, ((0, 0), (0, 0), (0, 1), (0, 1)))[:, :, 1:, 1:]
        p2 = xs[:, :, ::stride, ::stride]
        o1 = jnp.einsum('oc,nchw->nohw', params["w1"][:, :, 0, 0], p1)
        o2 = jnp.einsum('oc,nchw->nohw', params["w2"][:, :, 0, 0], p2)
        y = jnp.concatenate([o1, o2], axis=1)
    mean = y.mean(axis=(0, 2, 3), keepdims=True)
    var = ((y - mean) ** 2).mean(axis=(0, 2, 3), keepdims=True)
    yn = (y - mean) / jnp.sqrt(var + eps)
    g = params["gamma"].reshape(1, -1, 1, 1)
    b = params["beta"].reshape(1, -1, 1, 1)
    return g * yn + b


if __name__ == "__main__":
    # FactorizedReduction(in_planes=4, out_planes=8, stride=2) on (2, 4, 16, 16).
    N, Cin, Cout, H, W = 2, 4, 8, 16, 16

    key = jax.random.PRNGKey(0)
    k1, k2, k3, k4, k5, k6 = jax.random.split(key, 6)
    x = jax.random.normal(k1, (N, Cin, H, W), jnp.float32)

    # stride=2 branch (module default)
    params2 = {
        "w1": jax.random.normal(k2, (Cout // 2, Cin, 1, 1), jnp.float32) * 0.1,
        "w2": jax.random.normal(k3, (Cout // 2, Cin, 1, 1), jnp.float32) * 0.1,
        "gamma": 1.0 + 0.1 * jax.random.normal(k4, (Cout,), jnp.float32),
        "beta": 0.1 * jax.random.normal(k5, (Cout,), jnp.float32),
    }
    fr2 = jax.jit(lambda xx, pp: factorized_reduction(xx, pp, stride=2))
    out2 = jax.block_until_ready(fr2(x, params2))
    ref2 = reference(x, params2, stride=2)
    assert out2.shape == (N, Cout, H // 2, W // 2)
    assert jnp.allclose(out2, ref2, atol=1e-4, rtol=1e-4), "stride=2 mismatch"

    # stride=1 branch
    params1 = {
        "w": jax.random.normal(k6, (Cout, Cin, 1, 1), jnp.float32) * 0.1,
        "gamma": params2["gamma"],
        "beta": params2["beta"],
    }
    fr1 = jax.jit(lambda xx, pp: factorized_reduction(xx, pp, stride=1))
    out1 = jax.block_until_ready(fr1(x, params1))
    ref1 = reference(x, params1, stride=1)
    assert out1.shape == (N, Cout, H, W)
    assert jnp.allclose(out1, ref1, atol=1e-4, rtol=1e-4), "stride=1 mismatch"

    print("KERNEL_OK")
</pallas_src>

<mosaic_0001>
module attributes {stable_mosaic.version = 11 : i64} {
  func.func @_fr_stats_kernel(%arg0: i32, %arg1: i32, %arg2: memref<1x4x64xf32, #tpu.memory_space<vmem>>, %arg3: memref<1x4x64xf32, #tpu.memory_space<vmem>>, %arg4: memref<4x4xf32, #tpu.memory_space<vmem>>, %arg5: memref<4x4xf32, #tpu.memory_space<vmem>>, %arg6: memref<4x1xf32, #tpu.memory_space<vmem>>, %arg7: memref<4x1xf32, #tpu.memory_space<vmem>>, %arg8: memref<4x1xf32, #tpu.memory_space<vmem>>, %arg9: memref<4x1xf32, #tpu.memory_space<vmem>>) attributes {dimension_semantics = [#tpu.dimension_semantics<arbitrary>, #tpu.dimension_semantics<arbitrary>], iteration_bounds = array<i64: 2, 1>, scalar_prefetch = 0 : i64, scratch_operands = 0 : i64, tpu.core_type = #tpu.core_type<tc>, window_params = [{transform_indices = @transform_0, window_bounds = array<i64: 1, 4, 64>}, {transform_indices = @transform_1, window_bounds = array<i64: 1, 4, 64>}, {pipeline_mode = #tpu.pipeline_mode<synchronous>, transform_indices = @transform_2, window_bounds = array<i64: 4, 4>}, {pipeline_mode = #tpu.pipeline_mode<synchronous>, transform_indices = @transform_3, window_bounds = array<i64: 4, 4>}, {pipeline_mode = #tpu.pipeline_mode<synchronous>, transform_indices = @transform_4, window_bounds = array<i64: 4, 1>}, {pipeline_mode = #tpu.pipeline_mode<synchronous>, transform_indices = @transform_5, window_bounds = array<i64: 4, 1>}, {pipeline_mode = #tpu.pipeline_mode<synchronous>, transform_indices = @transform_6, window_bounds = array<i64: 4, 1>}, {pipeline_mode = #tpu.pipeline_mode<synchronous>, transform_indices = @transform_7, window_bounds = array<i64: 4, 1>}]} {
    %c0_i32 = arith.constant 0 : i32
    %0 = arith.cmpi eq, %arg0, %c0_i32 : i32
    %c0_i32_0 = arith.constant 0 : i32
    %1 = arith.cmpi eq, %arg1, %c0_i32_0 : i32
    %2 = arith.andi %0, %1 : i1
    %3 = arith.extui %2 : i1 to i32
    %c0_i32_1 = arith.constant 0 : i32
    %4 = arith.cmpi ne, %3, %c0_i32_1 : i32
    scf.if %4 {
      %cst_32 = arith.constant 0.000000e+00 : f32
      %35 = vector.broadcast %cst_32 : f32 to vector<4x1xf32>
      %c0_33 = arith.constant 0 : index
      %c0_34 = arith.constant 0 : index
      %36 = vector.load %arg6[%c0_33, %c0_34] : memref<4x1xf32, #tpu.memory_space<vmem>>, vector<4x1xf32>
      tpu.vector_store %arg6[%c0_33, %c0_34], %35 {strides = array<i32>} : memref<4x1xf32, #tpu.memory_space<vmem>>, vector<4x1xf32>,
      %cst_35 = arith.constant 0.000000e+00 : f32
      %37 = vector.broadcast %cst_35 : f32 to vector<4x1xf32>
      %c0_36 = arith.constant 0 : index
      %c0_37 = arith.constant 0 : index
      %38 = vector.load %arg7[%c0_36, %c0_37] : memref<4x1xf32, #tpu.memory_space<vmem>>, vector<4x1xf32>
      tpu.vector_store %arg7[%c0_36, %c0_37], %37 {strides = array<i32>} : memref<4x1xf32, #tpu.memory_space<vmem>>, vector<4x1xf32>,
      %cst_38 = arith.constant 0.000000e+00 : f32
      %39 = vector.broadcast %cst_38 : f32 to vector<4x1xf32>
      %c0_39 = arith.constant 0 : index
      %c0_40 = arith.constant 0 : index
      %40 = vector.load %arg8[%c0_39, %c0_40] : memref<4x1xf32, #tpu.memory_space<vmem>>, vector<4x1xf32>
      tpu.vector_store %arg8[%c0_39, %c0_40], %39 {strides = array<i32>} : memref<4x1xf32, #tpu.memory_space<vmem>>, vector<4x1xf32>,
      %cst_41 = arith.constant 0.000000e+00 : f32
      %41 = vector.broadcast %cst_41 : f32 to vector<4x1xf32>
      %c0_42 = arith.constant 0 : index
      %c0_43 = arith.constant 0 : index
      %42 = vector.load %arg9[%c0_42, %c0_43] : memref<4x1xf32, #tpu.memory_space<vmem>>, vector<4x1xf32>
      tpu.vector_store %arg9[%c0_42, %c0_43], %41 {strides = array<i32>} : memref<4x1xf32, #tpu.memory_space<vmem>>, vector<4x1xf32>,
    } else {
    }
    %c0 = arith.constant 0 : index
    %c0_2 = arith.constant 0 : index
    %5 = vector.load %arg4[%c0, %c0_2] : memref<4x4xf32, #tpu.memory_space<vmem>>, vector<4x4xf32>
    %c0_3 = arith.constant 0 : index
    %c0_4 = arith.constant 0 : index
    %c0_5 = arith.constant 0 : index
    %6 = vector.load %arg2[%c0_3, %c0_4, %c0_5] : memref<1x4x64xf32, #tpu.memory_space<vmem>>, vector<1x4x64xf32>
    %7 = vector.shape_cast %6 : vector<1x4x64xf32> to vector<4x64xf32>
    %cst = arith.constant dense<0.000000e+00> : vector<4x64xf32>
    %8 = tpu.matmul %5, %7, %cst {dimension_numbers = #tpu.dot_dimension_numbers<[1], [0], [0], [1], [0, 0, 1, 1], [], []>} : vector<4x4xf32>, vector<4x64xf32>, vector<4x64xf32> -> vector<4x64xf32>
    %c0_6 = arith.constant 0 : index
    %c0_7 = arith.constant 0 : index
    %9 = vector.load %arg6[%c0_6, %c0_7] : memref<4x1xf32, #tpu.memory_space<vmem>>, vector<4x1xf32>
    %cst_8 = arith.constant dense<0.000000e+00> : vector<4xf32>
    %10 = vector.multi_reduction <add>, %8, %cst_8 [1] : vector<4x64xf32> to vector<4xf32>
    %11 = vector.shape_cast %10 : vector<4xf32> to vector<4x1xf32>
    %12 = arith.addf %9, %11 : vector<4x1xf32>
    %c0_9 = arith.constant 0 : index
    %c0_10 = arith.constant 0 : index
    %13 = vector.load %arg6[%c0_9, %c0_10] : memref<4x1xf32, #tpu.memory_space<vmem>>, vector<4x1xf32>
    tpu.vector_store %arg6[%c0_9, %c0_10], %12 {strides = array<i32>} : memref<4x1xf32, #tpu.memory_space<vmem>>, vector<4x1xf32>,
    %c0_11 = arith.constant 0 : index
    %c0_12 = arith.constant 0 : index
    %14 = vector.load %arg8[%c0_11, %c0_12] : memref<4x1xf32, #tpu.memory_space<vmem>>, vector<4x1xf32>
    %15 = arith.mulf %8, %8 : vector<4x64xf32>
    %cst_13 = arith.constant dense<0.000000e+00> : vector<4xf32>
    %16 = vector.multi_reduction <add>, %15, %cst_13 [1] : vector<4x64xf32> to vector<4xf32>
    %17 = vector.shape_cast %16 : vector<4xf32> to vector<4x1xf32>
    %18 = arith.addf %14, %17 : vector<4x1xf32>
    %c0_14 = arith.constant 0 : index
    %c0_15 = arith.constant 0 : index
    %19 = vector.load %arg8[%c0_14, %c0_15] : memref<4x1xf32, #tpu.memory_space<vmem>>, vector<4x1xf32>
    tpu.vector_store %arg8[%c0_14, %c0_15], %18 {strides = array<i32>} : memref<4x1xf32, #tpu.memory_space<vmem>>, vector<4x1xf32>,
    %c0_16 = arith.constant 0 : index
    %c0_17 = arith.constant 0 : index
    %20 = vector.load %arg5[%c0_16, %c0_17] : memref<4x4xf32, #tpu.memory_space<vmem>>, vector<4x4xf32>
    %c0_18 = arith.constant 0 : index
    %c0_19 = arith.constant 0 : index
    %c0_20 = arith.constant 0 : index
    %21 = vector.load %arg3[%c0_18, %c0_19, %c0_20] : memref<1x4x64xf32, #tpu.memory_space<vmem>>, vector<1x4x64xf32>
    %22 = vector.shape_cast %21 : vector<1x4x64xf32> to vector<4x64xf32>
    %cst_21 = arith.constant dense<0.000000e+00> : vector<4x64xf32>
    %23 = tpu.matmul %20, %22, %cst_21 {dimension_numbers = #tpu.dot_dimension_numbers<[1], [0], [0], [1], [0, 0, 1, 1], [], []>} : vector<4x4xf32>, vector<4x64xf32>, vector<4x64xf32> -> vector<4x64xf32>
    %c0_22 = arith.constant 0 : index
    %c0_23 = arith.constant 0 : index
    %24 = vector.load %arg7[%c0_22, %c0_23] : memref<4x1xf32, #tpu.memory_space<vmem>>, vector<4x1xf32>
    %cst_24 = arith.constant dense<0.000000e+00> : vector<4xf32>
    %25 = vector.multi_reduction <add>, %23, %cst_24 [1] : vector<4x64xf32> to vector<4xf32>
    %26 = vector.shape_cast %25 : vector<4xf32> to vector<4x1xf32>
    %27 = arith.addf %24, %26 : vector<4x1xf32>
    %c0_25 = arith.constant 0 : index
    %c0_26 = arith.constant 0 : index
    %28 = vector.load %arg7[%c0_25, %c0_26] : memref<4x1xf32, #tpu.memory_space<vmem>>, vector<4x1xf32>
    tpu.vector_store %arg7[%c0_25, %c0_26], %27 {strides = array<i32>} : memref<4x1xf32, #tpu.memory_space<vmem>>, vector<4x1xf32>,
    %c0_27 = arith.constant 0 : index
    %c0_28 = arith.constant 0 : index
    %29 = vector.load %arg9[%c0_27, %c0_28] : memref<4x1xf32, #tpu.memory_space<vmem>>, vector<4x1xf32>
    %30 = arith.mulf %23, %23 : vector<4x64xf32>
    %cst_29 = arith.constant dense<0.000000e+00> : vector<4xf32>
    %31 = vector.multi_reduction <add>, %30, %cst_29 [1] : vector<4x64xf32> to vector<4xf32>
    %32 = vector.shape_cast %31 : vector<4xf32> to vector<4x1xf32>
    %33 = arith.addf %29, %32 : vector<4x1xf32>
    %c0_30 = arith.constant 0 : index
    %c0_31 = arith.constant 0 : index
    %34 = vector.load %arg9[%c0_30, %c0_31] : memref<4x1xf32, #tpu.memory_space<vmem>>, vector<4x1xf32>
    tpu.vector_store %arg9[%c0_30, %c0_31], %33 {strides = array<i32>} : memref<4x1xf32, #tpu.memory_space<vmem>>, vector<4x1xf32>,
    return
  }
  func.func @transform_0(%arg0: i32, %arg1: i32) -> (i32, i32, i32) {
    %c0_i32 = arith.constant 0 : i32
    %c0_i32_0 = arith.constant 0 : i32
    return %arg0, %c0_i32, %arg1 : i32, i32, i32
  }
  func.func @transform_1(%arg0: i32, %arg1: i32) -> (i32, i32, i32) {
    %c0_i32 = arith.constant 0 : i32
    %c0_i32_0 = arith.constant 0 : i32
    return %arg0, %c0_i32, %arg1 : i32, i32, i32
  }
  func.func @transform_2(%arg0: i32, %arg1: i32) -> (i32, i32) {
    %c0_i32 = arith.constant 0 : i32
    %c0_i32_0 = arith.constant 0 : i32
    %c0_i32_1 = arith.constant 0 : i32
    return %c0_i32, %c0_i32_0 : i32, i32
  }
  func.func @transform_3(%arg0: i32, %arg1: i32) -> (i32, i32) {
    %c0_i32 = arith.constant 0 : i32
    %c0_i32_0 = arith.constant 0 : i32
    %c0_i32_1 = arith.constant 0 : i32
    return %c0_i32, %c0_i32_0 : i32, i32
  }
  func.func @transform_4(%arg0: i32, %arg1: i32) -> (i32, i32) {
    %c0_i32 = arith.constant 0 : i32
    %c0_i32_0 = arith.constant 0 : i32
    %c0_i32_1 = arith.constant 0 : i32
    return %c0_i32, %c0_i32_0 : i32, i32
  }
  func.func @transform_5(%arg0: i32, %arg1: i32) -> (i32, i32) {
    %c0_i32 = arith.constant 0 : i32
    %c0_i32_0 = arith.constant 0 : i32
    %c0_i32_1 = arith.constant 0 : i32
    return %c0_i32, %c0_i32_0 : i32, i32
  }
  func.func @transform_6(%arg0: i32, %arg1: i32) -> (i32, i32) {
    %c0_i32 = arith.constant 0 : i32
    %c0_i32_0 = arith.constant 0 : i32
    %c0_i32_1 = arith.constant 0 : i32
    return %c0_i32, %c0_i32_0 : i32, i32
  }
  func.func @transform_7(%arg0: i32, %arg1: i32) -> (i32, i32) {
    %c0_i32 = arith.constant 0 : i32
    %c0_i32_0 = arith.constant 0 : i32
    %c0_i32_1 = arith.constant 0 : i32
    return %c0_i32, %c0_i32_0 : i32, i32
  }
}

module attributes {stable_mosaic.version = 11 : i64} {
  func.func @_fr_norm_kernel(%arg0: i32, %arg1: i32, %arg2: memref<1x4x64xf32, #tpu.memory_space<vmem>>, %arg3: memref<1x4x64xf32, #tpu.memory_space<vmem>>, %arg4: memref<4x4xf32, #tpu.memory_space<vmem>>, %arg5: memref<4x4xf32, #tpu.memory_space<vmem>>, %arg6: memref<8x1xf32, #tpu.memory_space<vmem>>, %arg7: memref<8x1xf32, #tpu.memory_space<vmem>>, %arg8: memref<1x8x64xf32, #tpu.memory_space<vmem>>) attributes {dimension_semantics = [#tpu.dimension_semantics<parallel>, #tpu.dimension_semantics<parallel>], iteration_bounds = array<i64: 2, 1>, scalar_prefetch = 0 : i64, scratch_operands = 0 : i64, tpu.core_type = #tpu.core_type<tc>, window_params = [{transform_indices = @transform_0, window_bounds = array<i64: 1, 4, 64>}, {transform_indices = @transform_1, window_bounds = array<i64: 1, 4, 64>}, {pipeline_mode = #tpu.pipeline_mode<synchronous>, transform_indices = @transform_2, window_bounds = array<i64: 4, 4>}, {pipeline_mode = #tpu.pipeline_mode<synchronous>, transform_indices = @transform_3, window_bounds = array<i64: 4, 4>}, {pipeline_mode = #tpu.pipeline_mode<synchronous>, transform_indices = @transform_4, window_bounds = array<i64: 8, 1>}, {pipeline_mode = #tpu.pipeline_mode<synchronous>, transform_indices = @transform_5, window_bounds = array<i64: 8, 1>}, {transform_indices = @transform_6, window_bounds = array<i64: 1, 8, 64>}]} {
    %c0 = arith.constant 0 : index
    %c0_0 = arith.constant 0 : index
    %0 = vector.load %arg4[%c0, %c0_0] : memref<4x4xf32, #tpu.memory_space<vmem>>, vector<4x4xf32>
    %c0_1 = arith.constant 0 : index
    %c0_2 = arith.constant 0 : index
    %c0_3 = arith.constant 0 : index
    %1 = vector.load %arg2[%c0_1, %c0_2, %c0_3] : memref<1x4x64xf32, #tpu.memory_space<vmem>>, vector<1x4x64xf32>
    %2 = vector.shape_cast %1 : vector<1x4x64xf32> to vector<4x64xf32>
    %cst = arith.constant dense<0.000000e+00> : vector<4x64xf32>
    %3 = tpu.matmul %0, %2, %cst {dimension_numbers = #tpu.dot_dimension_numbers<[1], [0], [0], [1], [0, 0, 1, 1], [], []>} : vector<4x4xf32>, vector<4x64xf32>, vector<4x64xf32> -> vector<4x64xf32>
    %c0_4 = arith.constant 0 : index
    %c0_5 = arith.constant 0 : index
    %4 = vector.load %arg6[%c0_4, %c0_5] : memref<8x1xf32, #tpu.memory_space<vmem>>, vector<4x1xf32>
    %5 = vector.broadcast %4 : vector<4x1xf32> to vector<4x64xf32>
    %6 = arith.mulf %3, %5 : vector<4x64xf32>
    %c0_6 = arith.constant 0 : index
    %c0_7 = arith.constant 0 : index
    %7 = vector.load %arg7[%c0_6, %c0_7] : memref<8x1xf32, #tpu.memory_space<vmem>>, vector<4x1xf32>
    %8 = vector.broadcast %7 : vector<4x1xf32> to vector<4x64xf32>
    %9 = arith.addf %6, %8 : vector<4x64xf32>
    %c0_8 = arith.constant 0 : index
    %c0_9 = arith.constant 0 : index
    %c0_10 = arith.constant 0 : index
    %10 = vector.load %arg8[%c0_8, %c0_9, %c0_10] : memref<1x8x64xf32, #tpu.memory_space<vmem>>, vector<1x4x64xf32>
    %11 = vector.shape_cast %10 : vector<1x4x64xf32> to vector<4x64xf32>
    %12 = vector.shape_cast %9 : vector<4x64xf32> to vector<1x4x64xf32>
    tpu.vector_store %arg8[%c0_8, %c0_9, %c0_10], %12 {strides = array<i32>} : memref<1x8x64xf32, #tpu.memory_space<vmem>>, vector<1x4x64xf32>,
    %c0_11 = arith.constant 0 : index
    %c0_12 = arith.constant 0 : index
    %13 = vector.load %arg5[%c0_11, %c0_12] : memref<4x4xf32, #tpu.memory_space<vmem>>, vector<4x4xf32>
    %c0_13 = arith.constant 0 : index
    %c0_14 = arith.constant 0 : index
    %c0_15 = arith.constant 0 : index
    %14 = vector.load %arg3[%c0_13, %c0_14, %c0_15] : memref<1x4x64xf32, #tpu.memory_space<vmem>>, vector<1x4x64xf32>
    %15 = vector.shape_cast %14 : vector<1x4x64xf32> to vector<4x64xf32>
    %cst_16 = arith.constant dense<0.000000e+00> : vector<4x64xf32>
    %16 = tpu.matmul %13, %15, %cst_16 {dimension_numbers = #tpu.dot_dimension_numbers<[1], [0], [0], [1], [0, 0, 1, 1], [], []>} : vector<4x4xf32>, vector<4x64xf32>, vector<4x64xf32> -> vector<4x64xf32>
    %c4 = arith.constant 4 : index
    %c0_17 = arith.constant 0 : index
    %17 = vector.load %arg6[%c4, %c0_17] : memref<8x1xf32, #tpu.memory_space<vmem>>, vector<4x1xf32>
    %18 = vector.broadcast %17 : vector<4x1xf32> to vector<4x64xf32>
    %19 = arith.mulf %16, %18 : vector<4x64xf32>
    %c4_18 = arith.constant 4 : index
    %c0_19 = arith.constant 0 : index
    %20 = vector.load %arg7[%c4_18, %c0_19] : memref<8x1xf32, #tpu.memory_space<vmem>>, vector<4x1xf32>
    %21 = vector.broadcast %20 : vector<4x1xf32> to vector<4x64xf32>
    %22 = arith.addf %19, %21 : vector<4x64xf32>
    %c0_20 = arith.constant 0 : index
    %c4_21 = arith.constant 4 : index
    %c0_22 = arith.constant 0 : index
    %23 = vector.load %arg8[%c0_20, %c4_21, %c0_22] : memref<1x8x64xf32, #tpu.memory_space<vmem>>, vector<1x4x64xf32>
    %24 = vector.shape_cast %23 : vector<1x4x64xf32> to vector<4x64xf32>
    %25 = vector.shape_cast %22 : vector<4x64xf32> to vector<1x4x64xf32>
    tpu.vector_store %arg8[%c0_20, %c4_21, %c0_22], %25 {strides = array<i32>} : memref<1x8x64xf32, #tpu.memory_space<vmem>>, vector<1x4x64xf32>,
    return
  }
  func.func @transform_0(%arg0: i32, %arg1: i32) -> (i32, i32, i32) {
    %c0_i32 = arith.constant 0 : i32
    %c0_i32_0 = arith.constant 0 : i32
    return %arg0, %c0_i32, %arg1 : i32, i32, i32
  }
  func.func @transform_1(%arg0: i32, %arg1: i32) -> (i32, i32, i32) {
    %c0_i32 = arith.constant 0 : i32
    %c0_i32_0 = arith.constant 0 : i32
    return %arg0, %c0_i32, %arg1 : i32, i32, i32
  }
  func.func @transform_2(%arg0: i32, %arg1: i32) -> (i32, i32) {
    %c0_i32 = arith.constant 0 : i32
    %c0_i32_0 = arith.constant 0 : i32
    %c0_i32_1 = arith.constant 0 : i32
    return %c0_i32, %c0_i32_0 : i32, i32
  }
  func.func @transform_3(%arg0: i32, %arg1: i32) -> (i32, i32) {
    %c0_i32 = arith.constant 0 : i32
    %c0_i32_0 = arith.constant 0 : i32
    %c0_i32_1 = arith.constant 0 : i32
    return %c0_i32, %c0_i32_0 : i32, i32
  }
  func.func @transform_4(%arg0: i32, %arg1: i32) -> (i32, i32) {
    %c0_i32 = arith.constant 0 : i32
    %c0_i32_0 = arith.constant 0 : i32
    %c0_i32_1 = arith.constant 0 : i32
    return %c0_i32, %c0_i32_0 : i32, i32
  }
  func.func @transform_5(%arg0: i32, %arg1: i32) -> (i32, i32) {
    %c0_i32 = arith.constant 0 : i32
    %c0_i32_0 = arith.constant 0 : i32
    %c0_i32_1 = arith.constant 0 : i32
    return %c0_i32, %c0_i32_0 : i32, i32
  }
  func.func @transform_6(%arg0: i32, %arg1: i32) -> (i32, i32, i32) {
    %c0_i32 = arith.constant 0 : i32
    %c0_i32_0 = arith.constant 0 : i32
    return %arg0, %c0_i32, %arg1 : i32, i32, i32
  }
}

</mosaic_0001>

<bundles_post_ra>
// kernel: _lambda_.2
= control target key start
LH: loop header
LB: loop body
LE: loop exit
PB: predicated region body
PF: predicated region fallthrough
CT: control target
= control target key end

     0   :  { %s695_s24 = smov 0   ;;  %s697_s25 = smov 0   ;;  %s770_s0 = inlined_call_operand.vmem [shape: f32[2,4,64], index: 0, kind: input, shape index: {}]   ;;  %s771_s1 = inlined_call_operand.vmem [shape: f32[2,4,64], index: 1, kind: input, shape index: {}]   ;;  %s772_s2 = inlined_call_operand.vmem [shape: f32[4,4], index: 2, kind: input, shape index: {}]   ;;  %s773_s3 = inlined_call_operand.vmem [shape: f32[4,4], index: 3, kind: input, shape index: {}]   ;;  %s774_s4 = inlined_call_operand.vmem [shape: f32[4,1], index: 4, kind: output, shape index: {0}]   ;;  %s775_s5 = inlined_call_operand.vmem [shape: f32[4,1], index: 5, kind: output, shape index: {1}]   ;;  %s776_s6 = inlined_call_operand.vmem [shape: f32[4,1], index: 6, kind: output, shape index: {2}]   ;;  %s777_s7 = inlined_call_operand.vmem [shape: f32[4,1], index: 7, kind: output, shape index: {3}]  }
   0x1   :  { %s699_s26 = smov 0  }
   0x2 LB: > { %s30_s27 = sadd.s32 1, %s646_s25  ;;  %p576_p0 = scmp.ge.s32.totalorder %s650_s26, 1  ;;  %s650_s26 = sphi %s699_s26, %s18_s26   ;;  %s646_s25 = sphi %s697_s25, %s779_s25   ;;  %s642_s24 = sphi %s695_s24, %s778_s24  }
   0x3   : > { %p32_p1 = scmp.ge.s32.totalorder %s30_s27, 2  ;;  %p254_p2 = scmp.lt.s32.totalorder %s650_s26, 3 }
   0x5   : > { %s781_s27 = smov (%p32_p1, %s30_s27), 0  ;;  %p255_p3 = pnand %p576_p0, %p254_p2 }
   0x6   : > { %p290_p4 = scmp.lt.s32.totalorder (!%p255_p3), %s642_s24, 1  ;;  %p304_p5 = scmp.eq.s32.totalorder (!%p255_p3), %s642_s24, 0 }
   0x7   : > { %258 = sbr.rel (%p255_p3) target bundleno = 387 (0x183), region = 36 }
   0xe   : > { %s783_s24 = smov (!%p290_p4, %s642_s24), 1  ;;  %309 = sbr.rel (!%p304_p5) target bundleno = 21 (0x15), region = 40 }
   0xf   : > { %s577_s28 = sshll.u32 %s783_s24, 2  ;;  %vm310_vm0 = vcmask (%p304_p5), 3072   ;;  %v652_v0 = vmov (%p304_p5), 0.0  }
  0x10   : > { %s296_s8 = scalar_lea.vmem %s770_s0, %s577_s28  ;;  %s303_s11 = scalar_lea.vmem %s771_s1, %s577_s28  ;;  %311 = vst.msk [vmem:[%s774_s4] sm:$0xf] (%p304_p5), %vm310_vm0, %v652_v0  ;;  %312 = vst.msk [vmem:[%s775_s5] sm:$0xf] (%p304_p5), %vm310_vm0, %v652_v0 }
  0x11   : > { %313 = vst.msk [vmem:[%s776_s6] sm:$0xf] (%p304_p5), %vm310_vm0, %v652_v0  ;;  %314 = vst.msk [vmem:[%s777_s7] sm:$0xf] (%p304_p5), %vm310_vm0, %v652_v0 }
  0x15 PF: > { %v316_v1 = vld [vmem:[%s296_s8] sm:$0xf]  ;;  %vm321_vm1 = vcmask 1043456   ;;  %vm317_vm2 = vcmask 31744   ;;  %v653_v2 = vmov 0.0   ;;  %vm654_vm3 = vmmov 0  }
  0x16   : > { %591 = vmatprep.subr.mxu0 %v653_v2  ;;  %596 = vmatprep.subr.mxu1 %v653_v2  ;;  %v411_v3 = vld [vmem:[%s303_s11] sm:$0xf]  ;;  %vm396_vm4 = vcmask 519168   ;;  %vm401_vm5 = vcmask 3072  }
  0x17   : > { %v315_v4 = vld [vmem:[%s772_s2] sm:$0xf]  ;;  %592 = vmatpush3.msk.msra.mxu0 %vm321_vm1, %v316_v1  ;;  %593 = vmatprep.mubr.msk.f32.mxu0 %vm654_vm3, %v653_v2 }
  0x18   : > { %v410_v5 = vld [vmem:[%s773_s3] sm:$0xf]  ;;  %597 = vmatpush3.msk.msra.mxu1 %vm321_vm1, %v411_v3  ;;  %598 = vmatprep.mubr.msk.f32.mxu1 %vm654_vm3, %v653_v2 }
  0x19   : > { %594 = vmatmul.mubr.msk.f32.vlgmr.msra.gmra.mrb[0].mxu0 %vm317_vm2, %v315_v4  ;;  %599 = vmatmul.mubr.msk.f32.vlgmr.msra.gmra.mrb[0].mxu1 %vm317_vm2, %v410_v5  ;;  %v488_v16 = vld [vmem:[%s775_s5] sm:$0xf] }
  0x1a   : > { %v395_v17 = vld [vmem:[%s774_s4] sm:$0xf] }
  0x1b   : > { %v494_v22 = vld [vmem:[%s777_s7] sm:$0xf] }
  0x1c   : > { %v403_v23 = vld [vmem:[%s776_s6] sm:$0xf] }
  0xec   : > { %v391_v6 = vpop.f32.mrb[0].mxu0  ;;  %v484_v7 = vpop.f32.mrb[0].mxu1 }
  0xed   : > { %v404_v8 = vmul.f32 %v391_v6, %v391_v6  ;;  %v495_v9 = vmul.f32 %v484_v7, %v484_v7  ;;  %v595_v10 = vpop.f32.mrb[1].mxu0  ;;  %v600_v11 = vpop.f32.mrb[1].mxu1  ;;  %v489_v12 = vsel %vm396_vm4, %v484_v7, 0.0  ;;  %v397_v13 = vsel %vm396_vm4, %v391_v6, 0.0 }
  0xee   : > { %490 = vadd.xlane.f32.xlu1 %v489_v12  ;;  %398 = vadd.xlane.f32.xlu0 %v397_v13 }
  0xef   : > { %v496_v14 = vsel %vm396_vm4, %v495_v9, 0.0  ;;  %v405_v15 = vsel %vm396_vm4, %v404_v8, 0.0 }
  0xf2   : > { %497 = vadd.xlane.f32.xlu1 %v496_v14  ;;  %406 = vadd.xlane.f32.xlu0 %v405_v15 }
 0x17b   : > { %v491_v18 = vpop.xlane.xlu1 %490  ;;  %v399_v19 = vpop.xlane.xlu0 %398 }
 0x17c   : > { %v492_v20 = vadd.f32 %v491_v18, %v488_v16  ;;  %v400_v21 = vadd.f32 %v399_v19, %v395_v17 }
 0x17e   : > { %493 = vst.msk [vmem:[%s775_s5] sm:$0xf] %vm401_vm5, %v492_v20  ;;  %402 = vst.msk [vmem:[%s774_s4] sm:$0xf] %vm401_vm5, %v400_v21 }
 0x17f   : > { %v498_v24 = vpop.xlane.xlu1 %497  ;;  %v407_v25 = vpop.xlane.xlu0 %406 }
 0x180   : > { %v499_v26 = vadd.f32 %v498_v24, %v494_v22  ;;  %v408_v27 = vadd.f32 %v407_v25, %v403_v23 }
 0x182   : > { %500 = vst.msk [vmem:[%s777_s7] sm:$0xf] %vm401_vm5, %v499_v26  ;;  %409 = vst.msk [vmem:[%s776_s6] sm:$0xf] %vm401_vm5, %v408_v27 }
 0x183 PF: > { %s18_s26 = sadd.s32 1, %s650_s26   ;;  %s778_s24 = smov %s646_s25 }
 0x184   : > { %p15_p6 = scmp.ge.s32.totalorder %s18_s26, 4   ;;  %s779_s25 = smov %s781_s27 }
 0x186   :  { %17 = sbr.rel (!%p15_p6) target bundleno = 2 (0x2), region = 93 }

// kernel: _lambda_.3
= control target key start
LH: loop header
LB: loop body
LE: loop exit
PB: predicated region body
PF: predicated region fallthrough
CT: control target
= control target key end

     0   :  { %s703_s21 = smov 0   ;;  %s705_s22 = smov 0   ;;  %s761_s0 = inlined_call_operand.vmem [shape: f32[2,4,64], index: 0, kind: input, shape index: {}]   ;;  %s762_s1 = inlined_call_operand.vmem [shape: f32[2,4,64], index: 1, kind: input, shape index: {}]   ;;  %s763_s2 = inlined_call_operand.vmem [shape: f32[4,4], index: 2, kind: input, shape index: {}]   ;;  %s764_s3 = inlined_call_operand.vmem [shape: f32[4,4], index: 3, kind: input, shape index: {}]   ;;  %s765_s4 = inlined_call_operand.vmem [shape: f32[8,1], index: 4, kind: input, shape index: {}]   ;;  %s766_s5 = inlined_call_operand.vmem [shape: f32[8,1], index: 5, kind: input, shape index: {}]   ;;  %s767_s6 = inlined_call_operand.vmem [shape: f32[2,8,64], index: 6, kind: output, shape index: {}]  }
   0x1   :  { %s707_s23 = smov 0  }
   0x2 LB: > { %s28_s24 = sadd.s32 1, %s659_s22  ;;  %p588_p0 = scmp.ge.s32.totalorder %s663_s23, 1  ;;  %s663_s23 = sphi %s707_s23, %s16_s23   ;;  %s659_s22 = sphi %s705_s22, %s769_s22   ;;  %s655_s21 = sphi %s703_s21, %s768_s21  }
   0x3   : > { %p30_p1 = scmp.ge.s32.totalorder %s28_s24, 2  ;;  %p244_p2 = scmp.lt.s32.totalorder %s663_s23, 3 }
   0x5   : > { %s771_s24 = smov (%p30_p1, %s28_s24), 0  ;;  %p245_p3 = pnand %p588_p0, %p244_p2 }
   0x6   : > { %p285_p4 = scmp.lt.s32.totalorder (!%p245_p3), %s655_s21, 1  ;;  %v665_v0 = vmov (!%p245_p3), 0.0   ;;  %v386_v1 = vld [vmem:[%s765_s4] sm:$0xf] (!%p245_p3)  ;;  %vm666_vm0 = vmmov (!%p245_p3), 0   ;;  %v667_v3 = vmov (!%p245_p3), 0  }
   0x7   : > { %248 = sbr.rel (%p245_p3) target bundleno = 237 (0xed), region = 44  ;;  %602 = vmatprep.subr.mxu0 (!%p245_p3), %v665_v0  ;;  %607 = vmatprep.subr.mxu1 (!%p245_p3), %v665_v0  ;;  %v393_v2 = vld [vmem:[%s766_s5] sm:$0xf] (!%p245_p3)  ;;  %vm312_vm1 = vcmask (!%p245_p3), 1043456   ;;  %vm308_vm2 = vcmask (!%p245_p3), 31744   ;;  %vm400_vm3 = vcmask (!%p245_p3), 519168  }
   0x8   : > { %604 = vmatprep.mubr.msk.f32.mxu0 (!%p245_p3), %vm666_vm0, %v665_v0  ;;  %609 = vmatprep.mubr.msk.f32.mxu1 (!%p245_p3), %vm666_vm0, %v665_v0  ;;  %v306_v4 = vld [vmem:[%s763_s2] sm:$0xf] (!%p245_p3)  ;;  %v480_v7 = vld [vmem:[%s765_s4 + $0x4] sm:$0xf] (!%p245_p3) }
   0x9   : > { %639 = vset.pattern.permute.xlu0 (!%p245_p3), %v667_v3  ;;  %640 = vset.pattern.permute.xlu1 (!%p245_p3), %v667_v3  ;;  %v402_v6 = vld [vmem:[%s764_s3] sm:$0xf] (!%p245_p3)  ;;  %v487_v9 = vld [vmem:[%s766_s5 + $0x4] sm:$0xf] (!%p245_p3) }
   0xa   : > { %389 = vperm.xlu0 (!%p245_p3), %639, %v386_v1   ;;  %396 = vperm.xlu1 (!%p245_p3), %640, %v393_v2  }
   0xe   : > { %s773_s21 = smov (!%p285_p4, %s655_s21), 1  ;;  %483 = vperm.xlu0 %639, %v480_v7   ;;  %490 = vperm.xlu1 %640, %v487_v9  }
   0xf   : > { %s589_s29 = sshll.u32 %s773_s21, 2  ;;  %s591_s20 = sshll.u32 %s773_s21, 3 }
  0x10   : > { %s291_s8 = scalar_lea.vmem %s761_s0, %s589_s29  ;;  %s298_s13 = scalar_lea.vmem %s762_s1, %s589_s29 }
  0x11   : > { %v307_v5 = vld [vmem:[%s291_s8] sm:$0xf]  ;;  %s305_s27 = scalar_lea.vmem %s767_s6, %s591_s20 }
  0x12   : > { %603 = vmatpush3.msk.msra.mxu0 %vm312_vm1, %v307_v5  ;;  %v403_v8 = vld [vmem:[%s298_s13] sm:$0xf] }
  0x13   : > { %608 = vmatpush3.msk.msra.mxu1 %vm312_vm1, %v403_v8  ;;  %605 = vmatmul.mubr.msk.f32.vlgmr.msra.gmra.mrb[0].mxu0 %vm308_vm2, %v306_v4 }
  0x14   : > { %610 = vmatmul.mubr.msk.f32.vlgmr.msra.gmra.mrb[0].mxu1 %vm308_vm2, %v402_v6 }
  0x89   : > { %v390_v10 = vpop.permute.xlu0 %389  ;;  %v397_v11 = vpop.permute.xlu1 %396 }
  0x8d   : > { %v484_v12 = vpop.permute.xlu0 %483  ;;  %v491_v19 = vpop.permute.xlu1 %490 }
  0xe6   : > { %v382_v13 = vpop.f32.mrb[0].mxu0 }
  0xe7   : > { %v392_v14 = vmul.f32 %v390_v10, %v382_v13  ;;  %v476_v15 = vpop.f32.mrb[0].mxu1  ;;  %v606_v16 = vpop.f32.mrb[1].mxu0 }
  0xe8   : > { %v486_v17 = vmul.f32 %v484_v12, %v476_v15  ;;  %v611_v18 = vpop.f32.mrb[1].mxu1 }
  0xe9   : > { %v399_v20 = vadd.f32 %v397_v11, %v392_v14 }
  0xea   : > { %v493_v21 = vadd.f32 %v491_v19, %v486_v17 }
  0xeb   : > { %401 = vst.msk [vmem:[%s305_s27] sm:$0xf] %vm400_vm3, %v399_v20 }
  0xec   : > { %494 = vst.msk [vmem:[%s305_s27 + $0x4] sm:$0xf] %vm400_vm3, %v493_v21 }
  0xed PF: > { %s16_s23 = sadd.s32 1, %s663_s23   ;;  %s768_s21 = smov %s659_s22 }
  0xee   : > { %p13_p5 = scmp.ge.s32.totalorder %s16_s23, 4   ;;  %s769_s22 = smov %s771_s24 }
  0xf0   :  { %15 = sbr.rel (!%p13_p5) target bundleno = 2 (0x2), region = 77 }

</bundles_post_ra>
